<compile_context>
chip_gen: v7x
topology: tpu7x:2x2x1
jax: 0.10.0
libtpu: 0.0.40
codegen_flags: <defaults>
</compile_context>

<pallas_src>
import jax
import jax.numpy as jnp
from jax.experimental import pallas as pl
from jax.experimental.pallas import tpu as pltpu


def _round_up(x, m):
    return ((x + m - 1) // m) * m


def _pick_tile(dim, preferred, align):
    """Largest multiple of `align` that divides `dim` and is <= max(preferred, align).
    `dim` must already be a multiple of `align`."""
    t = min(preferred, dim)
    t = max(align, (t // align) * align)
    while dim % t:
        t -= align
    return t


# --------------------------------------------------------------------------- kernels

def _fhead_kernel_fullk(x_ref, w_ref, b_ref, o_ref):
    # x_ref: (tm, K_pad), w_ref: (K_pad, tn), b_ref: (1, tn) f32, o_ref: (tm, tn)
    acc = jnp.dot(x_ref[...], w_ref[...], preferred_element_type=jnp.float32)
    o_ref[...] = (acc + b_ref[...]).astype(o_ref.dtype)


def _fhead_kernel_acc(x_ref, w_ref, b_ref, o_ref, acc_ref):
    # Fallback for very large K: K is the innermost ("arbitrary") grid axis.
    k = pl.program_id(2)

    @pl.when(k == 0)
    def _():
        acc_ref[...] = jnp.zeros_like(acc_ref)

    acc_ref[...] += jnp.dot(x_ref[...], w_ref[...],
                            preferred_element_type=jnp.float32)

    @pl.when(k == pl.num_programs(2) - 1)
    def _():
        o_ref[...] = (acc_ref[...] + b_ref[...]).astype(o_ref.dtype)


# ------------------------------------------------------------------ one-time param prep

def prepare_flatten_head_params(weight, bias, *, compute_dtype=None):
    """Hoist weight/bias preparation out of the hot path (do this once at model init).

    weight: (pred_len, S*D)  -- PyTorch nn.Linear layout
    bias:   (pred_len,)
    Returns (w_prep, b_prep, pred_len) with
      w_prep: (K_pad, N_pad) transposed, zero-padded, optionally cast to compute_dtype
      b_prep: (1, N_pad) float32
    """
    N, K = weight.shape
    K_pad = _round_up(K, 128)
    N_pad = _round_up(N, 128)

    w = weight
    if compute_dtype is not None:
        w = w.astype(compute_dtype)
    w = w.T  # (K, N): natural contraction layout for x @ w
    if (K_pad, N_pad) != (K, N):
        w = jnp.pad(w, ((0, K_pad - K), (0, N_pad - N)))

    b = bias.astype(jnp.float32).reshape(1, N)
    if N_pad != N:
        b = jnp.pad(b, ((0, 0), (0, N_pad - N)))
    return w, b, N


# ----------------------------------------------------------------------------- tiling

def _choose_tiles(M_pad, N_pad, K_pad, x_b, w_b, o_b, budget):
    """Return (tm, tn, tk, use_acc).  Prefers full-K tiles and streaming the weight once."""

    def cost(tm, tn, tk, acc):
        c = 2 * (tm * tk * x_b + tk * tn * w_b + tn * 4 + tm * tn * o_b)  # double-buffered
        if acc:
            c += tm * tn * 4
        return c

    # Full-K candidates: prefer tm = M_pad (weight streamed exactly once), big tn.
    for tm_pref in (M_pad, 1024, 512, 256, 128, 64, 32, 16, 8):
        if tm_pref > M_pad:
            continue
        tm = _pick_tile(M_pad, tm_pref, 8)
        for tn_pref in (min(N_pad, 512), 256, 128):
            if tn_pref > N_pad:
                continue
            tn = _pick_tile(N_pad, tn_pref, 128)
            if cost(tm, tn, K_pad, False) <= budget:
                return tm, tn, K_pad, False

    # Fallback: K-tiled accumulator path.
    tm = _pick_tile(M_pad, 256, 8)
    tn = _pick_tile(N_pad, 256, 128)
    tk = K_pad
    while cost(tm, tn, tk, True) > budget and tk > 128:
        tk = _pick_tile(K_pad, max(128, tk // 2), 128)
    return tm, tn, tk, True


# ---------------------------------------------------------------------------- forward

def flatten_head_forward(x, w_prep, b_prep, pred_len, *,
                         vmem_tile_budget=24 * 1024 * 1024):
    """Flatten(start_dim=-2) -> Linear(S*D, pred_len) -> Dropout(p=0) (identity).

    x:      (B, V, S, D)
    w_prep: (K_pad, N_pad)  from prepare_flatten_head_params
    b_prep: (1, N_pad) f32
    Output dtype follows the caller's x dtype; accumulation is always f32.
    """
    B, V, S, D = x.shape
    K = S * D
    M = B * V
    K_pad, N_pad = w_prep.shape
    out_dtype = x.dtype  # intentional: bf16-weight path still returns caller's dtype

    # Match compute dtype of the prepared weight (cast is a no-op on the f32 path).
    if x.dtype != w_prep.dtype:
        x = x.astype(w_prep.dtype)

    # Flatten last two dims + merge leading dims (pure reshape, no copy).
    x2 = x.reshape(M, K)

    # Gated padding: only pad when misaligned (K = S*D is often already 128-aligned).
    M_pad = _round_up(M, 8)
    if M_pad != M or K_pad != K:
        x2 = jnp.pad(x2, ((0, M_pad - M), (0, K_pad - K)))

    x_b = jnp.dtype(x2.dtype).itemsize
    w_b = jnp.dtype(w_prep.dtype).itemsize
    o_b = jnp.dtype(out_dtype).itemsize

    tm, tn, tk, use_acc = _choose_tiles(M_pad, N_pad, K_pad, x_b, w_b, o_b,
                                        vmem_tile_budget)

    # v7x megacore: if both parallel axes collapsed to 1 and M is large enough,
    # split M so both TensorCores get work.
    if (M_pad // tm) * (N_pad // tn) == 1 and M_pad >= 16:
        tm2 = _pick_tile(M_pad, max(8, M_pad // 2), 8)
        if M_pad // tm2 >= 2:
            tm = tm2

    tile_cost = 2 * (tm * tk * x_b + tk * tn * w_b + tn * 4 + tm * tn * o_b)
    tile_cost += tm * tn * 4 if use_acc else 0
    vmem_limit = min(48 * 1024 * 1024, max(32 * 1024 * 1024, int(tile_cost * 1.5)))

    cost_est = pl.CostEstimate(
        flops=2 * M_pad * N_pad * K_pad,
        transcendentals=0,
        bytes_accessed=(M_pad * K_pad * x_b + K_pad * N_pad * w_b
                        + M_pad * N_pad * o_b + N_pad * 4),
    )

    if not use_acc:
        grid = (M_pad // tm, N_pad // tn)
        out_pad = pl.pallas_call(
            _fhead_kernel_fullk,
            out_shape=jax.ShapeDtypeStruct((M_pad, N_pad), out_dtype),
            grid=grid,
            in_specs=[
                pl.BlockSpec((tm, tk), lambda i, j: (i, 0)),   # x tile (full K)
                pl.BlockSpec((tk, tn), lambda i, j: (0, j)),   # weight tile (K, N)
                pl.BlockSpec((1, tn), lambda i, j: (0, j)),    # bias tile
            ],
            out_specs=pl.BlockSpec((tm, tn), lambda i, j: (i, j)),
            compiler_params=pltpu.CompilerParams(
                dimension_semantics=("parallel", "parallel"),
                vmem_limit_bytes=vmem_limit,
            ),
            cost_estimate=cost_est,
        )(x2, w_prep, b_prep)
    else:
        grid = (M_pad // tm, N_pad // tn, K_pad // tk)
        out_pad = pl.pallas_call(
            _fhead_kernel_acc,
            out_shape=jax.ShapeDtypeStruct((M_pad, N_pad), out_dtype),
            grid=grid,
            in_specs=[
                pl.BlockSpec((tm, tk), lambda i, j, k: (i, k)),
                pl.BlockSpec((tk, tn), lambda i, j, k: (k, j)),
                pl.BlockSpec((1, tn), lambda i, j, k: (0, j)),
            ],
            out_specs=pl.BlockSpec((tm, tn), lambda i, j, k: (i, j)),
            scratch_shapes=[pltpu.VMEM((tm, tn), jnp.float32)],
            compiler_params=pltpu.CompilerParams(
                dimension_semantics=("parallel", "parallel", "arbitrary"),
                vmem_limit_bytes=vmem_limit,
            ),
            cost_estimate=cost_est,
        )(x2, w_prep, b_prep)

    # Drop the padding; Dropout(p=0) is the identity.
    return out_pad[:M, :pred_len].reshape(B, V, pred_len)


if __name__ == "__main__":
    # Small shapes consistent with the module: seq_len=8, d_model=32, pred_len=16.
    B, V, S, D, P = 2, 4, 8, 32, 16

    key = jax.random.PRNGKey(0)
    kx, kw, kb = jax.random.split(key, 3)

    x = jax.random.normal(kx, (B, V, S, D), dtype=jnp.float32)

    # PyTorch nn.Linear parameter shapes: weight (P, S*D), bias (P,)
    fan_in = S * D
    bound = 1.0 / (fan_in ** 0.5)
    weight = jax.random.uniform(kw, (P, fan_in), minval=-bound, maxval=bound,
                                dtype=jnp.float32)
    bias = jax.random.uniform(kb, (P,), minval=-bound, maxval=bound,
                              dtype=jnp.float32)

    # Reference (same math as the PyTorch forward).
    ref = x.reshape(B, V, fan_in) @ weight.T + bias

    # f32 path: one-time param prep (hoisted out of the hot path), then forward.
    w32, b32, pred_len = prepare_flatten_head_params(weight, bias)
    out = jax.block_until_ready(flatten_head_forward(x, w32, b32, pred_len))
    assert out.shape == (B, V, P)
    assert jnp.allclose(out, ref, atol=1e-4, rtol=1e-4)

    # bf16 compute path: weight stored persistently in bf16, f32 accumulation on MXU.
    wbf, bbf, _ = prepare_flatten_head_params(weight, bias,
                                              compute_dtype=jnp.bfloat16)
    out_bf16 = jax.block_until_ready(flatten_head_forward(x, wbf, bbf, pred_len))
    assert out_bf16.shape == (B, V, P)
    assert jnp.allclose(out_bf16, ref, atol=3e-2, rtol=3e-2)

    print("KERNEL_OK")
</pallas_src>

<mosaic_0001>
module attributes {stable_mosaic.version = 11 : i64} {
  func.func @_fhead_kernel_fullk(%arg0: i32, %arg1: i32, %arg2: memref<8x256xf32, #tpu.memory_space<vmem>>, %arg3: memref<256x128xf32, #tpu.memory_space<vmem>>, %arg4: memref<1x128xf32, #tpu.memory_space<vmem>>, %arg5: memref<8x128xf32, #tpu.memory_space<vmem>>) attributes {dimension_semantics = [#tpu.dimension_semantics<parallel>, #tpu.dimension_semantics<parallel>], iteration_bounds = array<i64: 1, 1>, scalar_prefetch = 0 : i64, scratch_operands = 0 : i64, tpu.core_type = #tpu.core_type<tc>, window_params = [{transform_indices = @transform_0, window_bounds = array<i64: 8, 256>}, {transform_indices = @transform_1, window_bounds = array<i64: 256, 128>}, {transform_indices = @transform_2, window_bounds = array<i64: 1, 128>}, {transform_indices = @transform_3, window_bounds = array<i64: 8, 128>}]} {
    %c0 = arith.constant 0 : index
    %c0_0 = arith.constant 0 : index
    %0 = vector.load %arg2[%c0, %c0_0] : memref<8x256xf32, #tpu.memory_space<vmem>>, vector<8x256xf32>
    %c0_1 = arith.constant 0 : index
    %c0_2 = arith.constant 0 : index
    %1 = vector.load %arg3[%c0_1, %c0_2] : memref<256x128xf32, #tpu.memory_space<vmem>>, vector<256x128xf32>
    %cst = arith.constant dense<0.000000e+00> : vector<8x128xf32>
    %2 = tpu.matmul %0, %1, %cst {dimension_numbers = #tpu.dot_dimension_numbers<[1], [0], [0], [1], [0, 0, 1, 1], [], []>} : vector<8x256xf32>, vector<256x128xf32>, vector<8x128xf32> -> vector<8x128xf32>
    %c0_3 = arith.constant 0 : index
    %c0_4 = arith.constant 0 : index
    %3 = vector.load %arg4[%c0_3, %c0_4] : memref<1x128xf32, #tpu.memory_space<vmem>>, vector<1x128xf32>
    %4 = vector.broadcast %3 : vector<1x128xf32> to vector<8x128xf32>
    %5 = arith.addf %2, %4 : vector<8x128xf32>
    %c0_5 = arith.constant 0 : index
    %c0_6 = arith.constant 0 : index
    %6 = vector.load %arg5[%c0_5, %c0_6] : memref<8x128xf32, #tpu.memory_space<vmem>>, vector<8x128xf32>
    tpu.vector_store %arg5[%c0_5, %c0_6], %5 {strides = array<i32>} : memref<8x128xf32, #tpu.memory_space<vmem>>, vector<8x128xf32>,
    return
  }
  func.func @transform_0(%arg0: i32, %arg1: i32) -> (i32, i32) {
    %c0_i32 = arith.constant 0 : i32
    %c0_i32_0 = arith.constant 0 : i32
    return %arg0, %c0_i32 : i32, i32
  }
  func.func @transform_1(%arg0: i32, %arg1: i32) -> (i32, i32) {
    %c0_i32 = arith.constant 0 : i32
    %c0_i32_0 = arith.constant 0 : i32
    return %c0_i32, %arg1 : i32, i32
  }
  func.func @transform_2(%arg0: i32, %arg1: i32) -> (i32, i32) {
    %c0_i32 = arith.constant 0 : i32
    %c0_i32_0 = arith.constant 0 : i32
    return %c0_i32, %arg1 : i32, i32
  }
  func.func @transform_3(%arg0: i32, %arg1: i32) -> (i32, i32) {
    %c0_i32 = arith.constant 0 : i32
    return %arg0, %arg1 : i32, i32
  }
}

</mosaic_0001>

<bundles_post_ra>
// kernel: tpu_custom_call.1
= control target key start
LH: loop header
LB: loop body
LE: loop exit
PB: predicated region body
PF: predicated region fallthrough
CT: control target
= control target key end

     0   :  { %8 = vsyncpa [#allocation3], 0  ;;  %s385_s0 = inlined_call_operand.hbm [shape: f32[8,256], index: 0, kind: input, shape index: {}]   ;;  %s386_s1 = inlined_call_operand.hbm [shape: f32[256,128], index: 1, kind: input, shape index: {}]   ;;  %s387_s2 = inlined_call_operand.vmem [shape: f32[1,128], index: 2, kind: input, shape index: {}]   ;;  %s388_s3 = inlined_call_operand.hbm [shape: f32[8,128], index: 3, kind: output, shape index: {}]  }
   0x1   :  { %9 = vsyncpa [#allocation6], 0 }
   0x2   :  { %10 = vsyncpa [#allocation4], 0  ;;  %s314_s12 = smov [#allocation2]   ;;  %s315_s14 = smov [#allocation5]  }
   0x3   :  { %s17_s13 = sshll.u32 %s314_s12, 4  ;;  %s26_s15 = sshll.u32 %s315_s14, 4  ;;  %s18_s13 = int_to_ptr.vmem [resolvable:$true] %s17_s13  ;;  %s339_s15 = int_to_ptr.vmem [resolvable:$true] %s26_s15 }
   0x4   :  { %s242_s18 = scalar_lea.hbm %s385_s0, 256 }
   0x5   :  { %p243_p0 = scmp.ne.s32.totalorder %s385_s0, %s242_s18  ;;  %p246_p1 = scmp.lt.u32.totalorder %s242_s18, %s385_s0 }
   0x7   :  { %p248_p2 = pnand %p246_p1, %p243_p0 }
   0x9   :  { %251 = shalt.err (!%p248_p2)
}
   0xa   :  { %s252_s23 = scalar_lea.vmem %s18_s13, 256  ;;  %p257_p4 = scmp.lt.s32.totalorder %s18_s13, %s18_s13 }
   0xb   :  { %p253_p3 = scmp.ne.s32.totalorder %s18_s13, %s252_s23  ;;  %p258_p5 = scmp.lt.s32.totalorder %s252_s23, %s252_s23 }
   0xd   :  { %p259_p6 = por %p258_p5, %p257_p4 }
   0xf   :  { %p260_p7 = pnand %p259_p6, %p253_p3 }
  0x11   :  { %263 = shalt.err (!%p260_p7)
}
  0x12   :  { %20 = dma.hbm_to_vmem [thread:$0]  %s385_s0, 256, %s18_s13, [#allocation3]  }
  0x13   :  { %s264_s28 = scalar_lea.hbm %s386_s1, 4096 }
  0x14   :  { %p265_p8 = scmp.ne.s32.totalorder %s386_s1, %s264_s28  ;;  %p268_p9 = scmp.lt.u32.totalorder %s264_s28, %s386_s1 }
  0x16   :  { %p270_p10 = pnand %p268_p9, %p265_p8 }
  0x18   :  { %273 = shalt.err (!%p270_p10)
}
  0x19   :  { %s274_s6 = scalar_lea.vmem %s339_s15, 4096  ;;  %p279_p12 = scmp.lt.s32.totalorder %s339_s15, %s339_s15 }
  0x1a   :  { %p275_p11 = scmp.ne.s32.totalorder %s339_s15, %s274_s6  ;;  %p280_p13 = scmp.lt.s32.totalorder %s274_s6, %s274_s6 }
  0x1c   :  { %p281_p0 = por %p280_p13, %p279_p12 }
  0x1e   :  { %p282_p1 = pnand %p281_p0, %p275_p11 }
  0x20   :  { %285 = shalt.err (!%p282_p1)
}
  0x21   :  { %s316_s0 = smov 128   ;;  %s317_s7 = smov 8  }
  0x22   :  { %32 = dma.hbm_to_vmem [thread:$0]  %s386_s1, 4096, %s339_s15, [#allocation6], %s316_s0, %s316_s0, %s317_s7  }
  0x23   :  { %308 = dma.done.wait [#allocation3], 256  }
  0x24   :  { %309 = vsyncadd [#allocation3], 4294967040 }
  0x25   :  { %310 = dma.done.wait [#allocation6], 4096  }
  0x26   :  { %311 = vsyncadd [#allocation6], 4294963200  ;;  %v59_v0 = vld [vmem:[#allocation5 + $0x80] sm:$0xff]  ;;  %v60_v1 = vld [vmem:[#allocation5 + $0x88] sm:$0xff]  ;;  %s318_s11 = smov [#allocation7]  }
  0x27   :  { %v43_v2 = vld [vmem:[#allocation5] sm:$0xff]  ;;  %v205_v3 = vpack.c.bf16 %v60_v1, %v59_v0  ;;  %v44_v4 = vld [vmem:[#allocation5 + $0x8] sm:$0xff]  ;;  %v61_v5 = vld [vmem:[#allocation5 + $0x90] sm:$0xff]  ;;  %s159_s12 = sshll.u32 %s318_s11, 4  ;;  %s160_s12 = int_to_ptr.vmem [resolvable:$true] %s159_s12 }
  0x28   :  { %v62_v6 = vld [vmem:[#allocation5 + $0x98] sm:$0xff]  ;;  %v207_v7 = vpack.c.bf16 %v44_v4, %v43_v2  ;;  %v45_v9 = vld [vmem:[#allocation5 + $0x10] sm:$0xff]  ;;  %v63_v11 = vld [vmem:[#allocation5 + $0xa0] sm:$0xff]  ;;  %s286_s13 = scalar_lea.vmem %s160_s12, 128  ;;  %p291_p3 = scmp.lt.s32.totalorder %s160_s12, %s160_s12 }
  0x29   :  { %v209_v8 = vpack.c.bf16 %v62_v6, %v61_v5  ;;  %v46_v10 = vld [vmem:[#allocation5 + $0x18] sm:$0xff]  ;;  %206 = vmatprep.subr.bf16.mxu0 %v205_v3  ;;  %v64_v12 = vld [vmem:[#allocation5 + $0xa8] sm:$0xff]  ;;  %v47_v15 = vld [vmem:[#allocation5 + $0x20] sm:$0xff]  ;;  %p287_p2 = scmp.ne.s32.totalorder %s160_s12, %s286_s13  ;;  %p292_p4 = scmp.lt.s32.totalorder %s286_s13, %s286_s13 }
  0x2a   :  { %208 = vmatpush3.bf16.msra.mxu0 %v207_v7  ;;  %v211_v13 = vpack.c.bf16 %v46_v10, %v45_v9  ;;  %v213_v14 = vpack.c.bf16 %v64_v12, %v63_v11  ;;  %v48_v16 = vld [vmem:[#allocation5 + $0x28] sm:$0xff]  ;;  %v65_v17 = vld [vmem:[#allocation5 + $0xb0] sm:$0xff]  ;;  %v66_v18 = vld [vmem:[#allocation5 + $0xb8] sm:$0xff] }
  0x2b   :  { %210 = vmatprep.subr.bf16.mxu0 %v209_v8  ;;  %v215_v19 = vpack.c.bf16 %v48_v16, %v47_v15  ;;  %v217_v20 = vpack.c.bf16 %v66_v18, %v65_v17  ;;  %v49_v21 = vld [vmem:[#allocation5 + $0x30] sm:$0xff]  ;;  %v50_v22 = vld [vmem:[#allocation5 + $0x38] sm:$0xff]  ;;  %v67_v23 = vld [vmem:[#allocation5 + $0xc0] sm:$0xff]  ;;  %p293_p5 = por %p292_p4, %p291_p3 }
  0x2c   :  { %v68_v24 = vld [vmem:[#allocation5 + $0xc8] sm:$0xff]  ;;  %v42_v25 = vld [vmem:[#allocation2 + $0x8] sm:$0xff]  ;;  %v219_v26 = vpack.c.bf16 %v50_v22, %v49_v21  ;;  %v51_v28 = vld [vmem:[#allocation5 + $0x40] sm:$0xff] }
  0x2d   :  { %146 = vmatprep.mubr.f32.mxu0 %v42_v25  ;;  %v221_v27 = vpack.c.bf16 %v68_v24, %v67_v23  ;;  %v52_v29 = vld [vmem:[#allocation5 + $0x48] sm:$0xff]  ;;  %v69_v30 = vld [vmem:[#allocation5 + $0xd0] sm:$0xff]  ;;  %v70_v31 = vld [vmem:[#allocation5 + $0xd8] sm:$0xff]  ;;  %p294_p6 = pnand %p293_p5, %p287_p2 }
  0x2e   :  { %212 = vmatpush3.bf16.msra.mxu0 %v211_v13  ;;  %v223_v32 = vpack.c.bf16 %v52_v29, %v51_v28  ;;  %v225_v33 = vpack.c.bf16 %v70_v31, %v69_v30  ;;  %v53_v34 = vld [vmem:[#allocation5 + $0x50] sm:$0xff]  ;;  %v54_v35 = vld [vmem:[#allocation5 + $0x58] sm:$0xff]  ;;  %v71_v36 = vld [vmem:[#allocation5 + $0xe0] sm:$0xff] }
  0x2f   :  { %214 = vmatprep.subr.bf16.mxu0 %v213_v14  ;;  %v72_v37 = vld [vmem:[#allocation5 + $0xe8] sm:$0xff]  ;;  %v227_v38 = vpack.c.bf16 %v54_v35, %v53_v34  ;;  %v55_v40 = vld [vmem:[#allocation5 + $0x60] sm:$0xff]  ;;  %v73_v42 = vld [vmem:[#allocation5 + $0xf0] sm:$0xff] }
  0x30   :  { %v229_v39 = vpack.c.bf16 %v72_v37, %v71_v36  ;;  %v56_v41 = vld [vmem:[#allocation5 + $0x68] sm:$0xff]  ;;  %v74_v43 = vld [vmem:[#allocation5 + $0xf8] sm:$0xff]  ;;  %v57_v46 = vld [vmem:[#allocation5 + $0x70] sm:$0xff] }
  0x31   :  { %v231_v44 = vpack.c.bf16 %v56_v41, %v55_v40  ;;  %v233_v45 = vpack.c.bf16 %v74_v43, %v73_v42  ;;  %v58_v47 = vld [vmem:[#allocation5 + $0x78] sm:$0xff]  ;;  %v41_v49 = vld [vmem:[#allocation2] sm:$0xff] }
  0x32   :  { %216 = vmatpush3.bf16.msra.mxu0 %v215_v19  ;;  %v235_v48 = vpack.c.bf16 %v58_v47, %v57_v46  ;;  %v169_v51 = vld [vmem:[%s387_s2] ss:$0 sm:$0xff] }
  0x33   :  { %218 = vmatprep.subr.bf16.mxu0 %v217_v20 }
  0x36   :  { %220 = vmatpush3.bf16.msra.mxu0 %v219_v26 }
  0x37   :  { %222 = vmatprep.subr.bf16.mxu0 %v221_v27 }
  0x3a   :  { %224 = vmatpush3.bf16.msra.mxu0 %v223_v32 }
  0x3b   :  { %226 = vmatprep.subr.bf16.mxu0 %v225_v33 }
  0x3e   :  { %228 = vmatpush3.bf16.msra.mxu0 %v227_v38 }
  0x3f   :  { %230 = vmatprep.subr.bf16.mxu0 %v229_v39 }
  0x42   :  { %232 = vmatpush3.bf16.msra.mxu0 %v231_v44 }
  0x43   :  { %234 = vmatprep.subr.bf16.mxu0 %v233_v45 }
  0x46   :  { %236 = vmatpush3.bf16.msra.mxu0 %v235_v48 }
  0x49   :  { %147 = vmatmul.mubr.f32.vlgmr.msra.gmra.mrb[0].mxu0 %v41_v49 }
 0x11c   :  { %v202_v50 = vpop.f32.mrb[0].mxu0 }
 0x11d   :  { %v203_v52 = vpop.f32.mrb[1].mxu0 }
 0x11e   :  { %v204_v53 = vadd.f32 %v203_v52, %v202_v50 }
 0x120   :  { %v149_v54 = vadd.f32 %v204_v53, %v169_v51 }
 0x122   :  { %152 = vst [vmem:[#allocation7] sm:$0xff] %v149_v54 }
 0x123   :  { %297 = shalt.err (!%p294_p6)
}
 0x124   :  { %s298_s16 = scalar_lea.hbm %s388_s3, 128 }
 0x125   :  { %p299_p7 = scmp.ne.s32.totalorder %s388_s3, %s298_s16  ;;  %p302_p8 = scmp.lt.u32.totalorder %s298_s16, %s388_s3 }
 0x127   :  { %p304_p9 = pnand %p302_p8, %p299_p7 }
 0x129   :  { %307 = shalt.err (!%p304_p9)
}
 0x12a   :  { %162 = dma.vmem_to_hbm [thread:$0]  %s160_s12, 128, %s388_s3, [#allocation4]  }
 0x12b   :  { %312 = dma.done.wait [#allocation4], 128  }
 0x12c   :  { %313 = vsyncadd [#allocation4], 4294967168 }
 0x12d   :  { %166 = vsyncpa [#allocation3], 1 }
 0x12e   :  { %167 = vsyncpa [#allocation6], 1 }
 0x12f   :  { %168 = vsyncpa [#allocation4], 1 }

</bundles_post_ra>
